<compile_context>
chip_gen: v7x
topology: tpu7x:2x2x1
jax: 0.10.0
libtpu: 0.0.40
codegen_flags: <defaults>
</compile_context>

<pallas_src>
import functools

import jax
import jax.numpy as jnp
from jax.experimental import pallas as pl
from jax.experimental.pallas import tpu as pltpu

# ----------------------------- model hyper-params -----------------------------
SCALE_CLS = 7.0
NUM_CLASSES = 64
C_IN = 16          # input channels of the (synthetic) backbone
H = W = 6          # forward() hard-codes 6x6 spatial features
HW = H * W
NFEAT = 32         # backbone feature channels (small synthetic stand-in)
K_WAY = 5
N_TRAIN = 5        # 5-way support set
N_TEST = 6
BATCH = 2
EPS = 1e-12        # F.normalize eps


def _round_up(x, m):
    return ((x + m - 1) // m) * m


# ------------------------------ fused Pallas kernel ----------------------------
def fused_forward_kernel(x_ref, wb_ref, mt_ref, ysum_ref, wc_ref, bc_ref,
                         logits_ref, scores_ref, *, tr_pad, te_pad, scale):
    """Whole forward pass in one invocation; everything stays in VMEM / vregs."""
    f32 = jnp.float32

    # 1) base feature extractor (1x1 conv + ReLU) over the fused train+test slab:
    #    ONE lane-dense MXU matmul; the bias is folded into the augmented ones-row.
    f = jnp.maximum(
        jnp.dot(wb_ref[...], x_ref[...], preferred_element_type=f32), 0.0)
    ftr = f[:, :tr_pad]                     # (NFEAT, tr_pad)  lane-aligned slice
    fte = f[:, tr_pad:tr_pad + te_pad]      # (NFEAT, te_pad)  lane-aligned slice

    # 2) class prototypes: ytrain^T bmm, /counts and mean-over-HW are folded into
    #    the precomputed block-diagonal matrix MT -> one channel-first matmul.
    fr = jnp.dot(ftr, mt_ref[...], preferred_element_type=f32)   # (NFEAT, bk_pad)

    # 3) F.normalize(p=2, dim=channel): x * rsqrt(max(||x||^2, eps^2)) on the EUP.
    #    Prototype normalization is hoisted: computed once per (b, K), not per test.
    frn = fr * jax.lax.rsqrt(
        jnp.maximum(jnp.sum(fr * fr, axis=0, keepdims=True), EPS * EPS))
    fte_hat = fte * jax.lax.rsqrt(
        jnp.maximum(jnp.sum(fte * fte, axis=0, keepdims=True), EPS * EPS))

    # 4) cosine cls_scores: ONE (bk_pad, NFEAT) x (NFEAT, te_pad) matmul feeding a
    #    single lane-dense unmasked (16, 512) store; cross-batch blocks are garbage
    #    and sliced off in the wrapper.
    scores_ref[...] = scale * jax.lax.dot_general(
        frn, fte_hat, (((0,), (0,)), ((), ())), preferred_element_type=f32)

    # 5) ytest-weighted feature selection + 1x1-conv classifier: a single lane-dense
    #    (NUM_CLASSES, C) @ (C, te_pad) matmul with a 512-wide unmasked store.
    logits_ref[...] = (jnp.dot(wc_ref[...], fte * ysum_ref[...],
                               preferred_element_type=f32) + bc_ref[...])


# ------------------------------ forward wrapper --------------------------------
@jax.jit
def model_forward(xtrain, xtest, ytrain, ytest, params):
    """Training-mode Model.forward: returns (ytest_logits, cls_scores)."""
    b, n_tr = xtrain.shape[:2]
    n_te = xtest.shape[1]
    k = ytrain.shape[2]
    f32 = jnp.float32

    tr_cols = b * n_tr * HW
    te_cols = b * n_te * HW
    tr_pad = _round_up(tr_cols, 128)        # 360 -> 384
    te_pad = _round_up(te_cols, 128)        # 432 -> 512
    bk_pad = _round_up(b * k, 8)            # 10  -> 16

    # ---- layout plumbing only (tiny arrays; no feature compute here) ----
    def col_slab(x, n, pad_to):
        s = (x.reshape(b * n, C_IN, HW).transpose(1, 0, 2)
             .reshape(C_IN, b * n * HW))
        # extra ones-row folds the base-conv bias into the matmul; the 1.0 garbage
        # in padded columns is killed downstream (zero MT rows / zero ysum lanes).
        return jnp.pad(s, ((0, 1), (0, pad_to - b * n * HW)), constant_values=1.0)

    x_aug = jnp.concatenate([col_slab(xtrain, n_tr, tr_pad),
                             col_slab(xtest, n_te, te_pad)], axis=1)  # (C_IN+1, 896)
    wb_aug = jnp.concatenate([params["w_base"],
                              params["b_base"][:, None]], axis=1)     # (NFEAT, C_IN+1)

    # Block-diagonal prototype matrix in (train-col, proto-col) orientation; folds
    # ytrain transpose, bmm, /counts and mean-over-HW.  (zero-support guard on
    # counts; a no-op for valid episodes.)
    counts = jnp.maximum(jnp.sum(ytrain, axis=1), EPS)                # (b, K)
    y_norm = ytrain / (HW * counts[:, None, :])                       # (b, n_tr, K)
    blk = jnp.repeat(jnp.transpose(y_norm, (0, 2, 1)), HW, axis=2)    # (b, K, n_tr*HW)
    mt = jnp.einsum('pq,qkr->prqk', jnp.eye(b, dtype=f32), blk)       # (b,n_tr*HW,b,K)
    mt = mt.reshape(tr_cols, b * k)
    mt = jnp.pad(mt, ((0, tr_pad - tr_cols), (0, bk_pad - b * k)))    # (tr_pad, bk_pad)

    # ytest weighting: with the identity-CAM stand-in, sum_k ytest*ftest_cam reduces
    # to ftest * sum_k ytest; broadcast per-sample scalar over HW lanes, zero-padded.
    ysum = jnp.repeat(jnp.sum(ytest, axis=-1).reshape(-1), HW)        # (te_cols,)
    ysum = jnp.pad(ysum, (0, te_pad - te_cols)).reshape(1, te_pad)

    wc = params["w_cls"]                                              # (NUM_CLASSES, NFEAT)
    bc = params["b_cls"].reshape(NUM_CLASSES, 1)

    flops = 2 * (NFEAT * (C_IN + 1) * (tr_pad + te_pad)
                 + NFEAT * tr_pad * bk_pad
                 + bk_pad * NFEAT * te_pad
                 + NUM_CLASSES * NFEAT * te_pad)
    bytes_accessed = 4 * (x_aug.size + wb_aug.size + mt.size + ysum.size
                          + wc.size + bc.size
                          + NUM_CLASSES * te_pad + bk_pad * te_pad)
    cost = pl.CostEstimate(flops=flops, transcendentals=te_pad + bk_pad,
                           bytes_accessed=bytes_accessed)

    vmem = pl.BlockSpec(memory_space=pltpu.MemorySpace.VMEM)
    kern = functools.partial(fused_forward_kernel, tr_pad=tr_pad, te_pad=te_pad,
                             scale=SCALE_CLS)
    logits_slab, scores_slab = pl.pallas_call(
        kern,
        out_shape=(jax.ShapeDtypeStruct((NUM_CLASSES, te_pad), f32),
                   jax.ShapeDtypeStruct((bk_pad, te_pad), f32)),
        in_specs=[vmem] * 6,
        out_specs=(vmem, vmem),
        cost_estimate=cost,
    )(x_aug, wb_aug, mt, ysum, wc, bc)

    logits = (logits_slab[:, :te_cols].reshape(NUM_CLASSES, b, n_te, HW)
              .transpose(1, 2, 0, 3).reshape(b * n_te, NUM_CLASSES, H, W))
    blocks = [scores_slab[i * k:(i + 1) * k, i * n_te * HW:(i + 1) * n_te * HW]
              for i in range(b)]
    cls_scores = (jnp.stack(blocks, axis=0).reshape(b, k, n_te, HW)
                  .transpose(0, 2, 1, 3).reshape(b * n_te, k, H, W))
    return logits, cls_scores


# ------------------------- pure-JAX reference (no Pallas) -----------------------
def reference_forward(xtrain, xtest, ytrain, ytest, params):
    """Direct jnp mirror of the PyTorch forward() with the same stand-ins."""
    b, n_tr = xtrain.shape[:2]
    n_te = xtest.shape[1]
    k = ytrain.shape[2]
    w_b, b_b = params["w_base"], params["b_base"]
    w_c, b_c = params["w_cls"], params["b_cls"]

    x = jnp.concatenate([xtrain.reshape(-1, C_IN, HW),
                         xtest.reshape(-1, C_IN, HW)], axis=0)
    f = jax.nn.relu(jnp.einsum('oc,nch->noh', w_b, x) + b_b[None, :, None])

    ftrain = f[:b * n_tr].reshape(b, n_tr, NFEAT * HW)
    yt = jnp.transpose(ytrain, (0, 2, 1))
    proto = jnp.einsum('bkn,bnd->bkd', yt, ftrain)
    proto = proto / jnp.sum(yt, axis=2, keepdims=True)
    proto = proto.reshape(b, k, NFEAT, HW)
    ftest = f[b * n_tr:].reshape(b, n_te, NFEAT, HW)

    # identity CAM stand-in
    ftr_cam = jnp.broadcast_to(proto[:, None], (b, n_te, k, NFEAT, HW))
    fte_cam = jnp.broadcast_to(ftest[:, :, None], (b, n_te, k, NFEAT, HW))

    fr = jnp.mean(ftr_cam, axis=-1)                              # (b, n_te, K, C)
    fte_n = fte_cam / jnp.maximum(
        jnp.sqrt(jnp.sum(fte_cam ** 2, axis=3, keepdims=True)), EPS)
    fr_n = fr / jnp.maximum(
        jnp.sqrt(jnp.sum(fr ** 2, axis=3, keepdims=True)), EPS)
    cls_scores = SCALE_CLS * jnp.sum(fte_n * fr_n[..., None], axis=3)
    cls_scores = cls_scores.reshape(b * n_te, k, H, W)

    sel = jnp.einsum('btkch,btk->btch', fte_cam, ytest)          # (b, n_te, C, HW)
    logits = jnp.einsum('oc,btch->btoh', w_c, sel) + b_c[None, None, :, None]
    logits = logits.reshape(b * n_te, NUM_CLASSES, H, W)
    return logits, cls_scores


# ------------------------------------ main --------------------------------------
if __name__ == "__main__":
    key = jax.random.PRNGKey(0)
    k1, k2, k3, k4, k5, k6 = jax.random.split(key, 6)

    # deterministic synthetic parameters (no checkpoint)
    params = {
        "w_base": jax.random.normal(k1, (NFEAT, C_IN), jnp.float32) * 0.1,
        "b_base": jax.random.normal(k2, (NFEAT,), jnp.float32) * 0.01,
        "w_cls": jax.random.normal(k3, (NUM_CLASSES, NFEAT), jnp.float32) * 0.1,
        "b_cls": jax.random.normal(k4, (NUM_CLASSES,), jnp.float32) * 0.01,
    }

    xtrain = jax.random.normal(k5, (BATCH, N_TRAIN, C_IN, H, W), jnp.float32)
    xtest = jax.random.normal(k6, (BATCH, N_TEST, C_IN, H, W), jnp.float32)

    # deterministic labels -> one-hot (matches one_hot() helper: nKnovel=5)
    train_labels = jnp.tile(jnp.arange(N_TRAIN) % K_WAY, (BATCH, 1))
    test_labels = jnp.tile(jnp.arange(N_TEST) % K_WAY, (BATCH, 1))
    ytrain = jax.nn.one_hot(train_labels, K_WAY, dtype=jnp.float32)   # (B, n_train, K)
    ytest = jax.nn.one_hot(test_labels, K_WAY, dtype=jnp.float32)     # (B, n_test, K)

    logits, cls_scores = model_forward(xtrain, xtest, ytrain, ytest, params)
    jax.block_until_ready((logits, cls_scores))

    assert logits.shape == (BATCH * N_TEST, NUM_CLASSES, H, W), logits.shape
    assert cls_scores.shape == (BATCH * N_TEST, K_WAY, H, W), cls_scores.shape

    ref_logits, ref_scores = reference_forward(xtrain, xtest, ytrain, ytest, params)
    assert bool(jnp.allclose(logits, ref_logits, rtol=1e-2, atol=1e-2)), \
        float(jnp.max(jnp.abs(logits - ref_logits)))
    assert bool(jnp.allclose(cls_scores, ref_scores, rtol=1e-2, atol=1e-2)), \
        float(jnp.max(jnp.abs(cls_scores - ref_scores)))

    print("KERNEL_OK")
</pallas_src>

<mosaic_0001>
module attributes {stable_mosaic.version = 11 : i64} {
  func.func @fused_forward_kernel(%arg0: memref<17x896xf32, #tpu.memory_space<vmem>>, %arg1: memref<32x17xf32, #tpu.memory_space<vmem>>, %arg2: memref<384x16xf32, #tpu.memory_space<vmem>>, %arg3: memref<1x512xf32, #tpu.memory_space<vmem>>, %arg4: memref<64x32xf32, #tpu.memory_space<vmem>>, %arg5: memref<64x1xf32, #tpu.memory_space<vmem>>, %arg6: memref<64x512xf32, #tpu.memory_space<vmem>>, %arg7: memref<16x512xf32, #tpu.memory_space<vmem>>) attributes {dimension_semantics = [], scalar_prefetch = 0 : i64, scratch_operands = 0 : i64, tpu.core_type = #tpu.core_type<tc>} {
    %c0 = arith.constant 0 : index
    %c0_0 = arith.constant 0 : index
    %0 = vector.load %arg1[%c0, %c0_0] : memref<32x17xf32, #tpu.memory_space<vmem>>, vector<32x17xf32>
    %c0_1 = arith.constant 0 : index
    %c0_2 = arith.constant 0 : index
    %1 = vector.load %arg0[%c0_1, %c0_2] : memref<17x896xf32, #tpu.memory_space<vmem>>, vector<17x896xf32>
    %cst = arith.constant dense<0.000000e+00> : vector<32x896xf32>
    %2 = tpu.matmul %0, %1, %cst {dimension_numbers = #tpu.dot_dimension_numbers<[1], [0], [0], [1], [0, 0, 1, 1], [], []>} : vector<32x17xf32>, vector<17x896xf32>, vector<32x896xf32> -> vector<32x896xf32>
    %cst_3 = arith.constant 0.000000e+00 : f32
    %3 = vector.broadcast %cst_3 : f32 to vector<32x896xf32>
    %4 = arith.maximumf %2, %3 : vector<32x896xf32>
    %5 = vector.extract_strided_slice %4 {offsets = [0, 0], sizes = [32, 384], strides = [1, 1]} : vector<32x896xf32> to vector<32x384xf32>
    %6 = vector.extract_strided_slice %4 {offsets = [0, 384], sizes = [32, 512], strides = [1, 1]} : vector<32x896xf32> to vector<32x512xf32>
    %c0_4 = arith.constant 0 : index
    %c0_5 = arith.constant 0 : index
    %7 = vector.load %arg2[%c0_4, %c0_5] : memref<384x16xf32, #tpu.memory_space<vmem>>, vector<384x16xf32>
    %cst_6 = arith.constant dense<0.000000e+00> : vector<32x16xf32>
    %8 = tpu.matmul %5, %7, %cst_6 {dimension_numbers = #tpu.dot_dimension_numbers<[1], [0], [0], [1], [0, 0, 1, 1], [], []>} : vector<32x384xf32>, vector<384x16xf32>, vector<32x16xf32> -> vector<32x16xf32>
    %9 = arith.mulf %8, %8 : vector<32x16xf32>
    %cst_7 = arith.constant dense<0.000000e+00> : vector<16xf32>
    %10 = vector.multi_reduction <add>, %9, %cst_7 [0] : vector<32x16xf32> to vector<16xf32>
    %11 = vector.shape_cast %10 : vector<16xf32> to vector<1x16xf32>
    %cst_8 = arith.constant 1.000000e-24 : f32
    %12 = vector.broadcast %cst_8 : f32 to vector<1x16xf32>
    %13 = arith.maximumf %11, %12 : vector<1x16xf32>
    %14 = math.rsqrt %13 : vector<1x16xf32>
    %15 = vector.broadcast %14 : vector<1x16xf32> to vector<32x16xf32>
    %16 = arith.mulf %8, %15 : vector<32x16xf32>
    %17 = arith.mulf %6, %6 : vector<32x512xf32>
    %cst_9 = arith.constant dense<0.000000e+00> : vector<512xf32>
    %18 = vector.multi_reduction <add>, %17, %cst_9 [0] : vector<32x512xf32> to vector<512xf32>
    %19 = vector.shape_cast %18 : vector<512xf32> to vector<1x512xf32>
    %cst_10 = arith.constant 1.000000e-24 : f32
    %20 = vector.broadcast %cst_10 : f32 to vector<1x512xf32>
    %21 = arith.maximumf %19, %20 : vector<1x512xf32>
    %22 = math.rsqrt %21 : vector<1x512xf32>
    %23 = vector.broadcast %22 : vector<1x512xf32> to vector<32x512xf32>
    %24 = arith.mulf %6, %23 : vector<32x512xf32>
    %cst_11 = arith.constant dense<0.000000e+00> : vector<16x512xf32>
    %25 = tpu.matmul %16, %24, %cst_11 {dimension_numbers = #tpu.dot_dimension_numbers<[0], [0], [1], [1], [0, 1, 1, 1], [], []>} : vector<32x16xf32>, vector<32x512xf32>, vector<16x512xf32> -> vector<16x512xf32>
    %cst_12 = arith.constant 7.000000e+00 : f32
    %26 = vector.broadcast %cst_12 : f32 to vector<16x512xf32>
    %27 = arith.mulf %26, %25 : vector<16x512xf32>
    %c0_13 = arith.constant 0 : index
    %c0_14 = arith.constant 0 : index
    %28 = vector.load %arg7[%c0_13, %c0_14] : memref<16x512xf32, #tpu.memory_space<vmem>>, vector<16x512xf32>
    tpu.vector_store %arg7[%c0_13, %c0_14], %27 {strides = array<i32>} : memref<16x512xf32, #tpu.memory_space<vmem>>, vector<16x512xf32>,
    %c0_15 = arith.constant 0 : index
    %c0_16 = arith.constant 0 : index
    %29 = vector.load %arg4[%c0_15, %c0_16] : memref<64x32xf32, #tpu.memory_space<vmem>>, vector<64x32xf32>
    %c0_17 = arith.constant 0 : index
    %c0_18 = arith.constant 0 : index
    %30 = vector.load %arg3[%c0_17, %c0_18] : memref<1x512xf32, #tpu.memory_space<vmem>>, vector<1x512xf32>
    %31 = vector.broadcast %30 : vector<1x512xf32> to vector<32x512xf32>
    %32 = arith.mulf %6, %31 : vector<32x512xf32>
    %cst_19 = arith.constant dense<0.000000e+00> : vector<64x512xf32>
    %33 = tpu.matmul %29, %32, %cst_19 {dimension_numbers = #tpu.dot_dimension_numbers<[1], [0], [0], [1], [0, 0, 1, 1], [], []>} : vector<64x32xf32>, vector<32x512xf32>, vector<64x512xf32> -> vector<64x512xf32>
    %c0_20 = arith.constant 0 : index
    %c0_21 = arith.constant 0 : index
    %34 = vector.load %arg5[%c0_20, %c0_21] : memref<64x1xf32, #tpu.memory_space<vmem>>, vector<64x1xf32>
    %35 = vector.broadcast %34 : vector<64x1xf32> to vector<64x512xf32>
    %36 = arith.addf %33, %35 : vector<64x512xf32>
    %c0_22 = arith.constant 0 : index
    %c0_23 = arith.constant 0 : index
    %37 = vector.load %arg6[%c0_22, %c0_23] : memref<64x512xf32, #tpu.memory_space<vmem>>, vector<64x512xf32>
    tpu.vector_store %arg6[%c0_22, %c0_23], %36 {strides = array<i32>} : memref<64x512xf32, #tpu.memory_space<vmem>>, vector<64x512xf32>,
    return
  }
}

</mosaic_0001>

<bundles_post_ra>
// kernel: model_forward.1
= control target key start
LH: loop header
LB: loop body
LE: loop exit
PB: predicated region body
PF: predicated region fallthrough
CT: control target
= control target key end

     0   :  { %v1670_v3 = vmov 0.0   ;;  %vm63_vm0 = vcmask 1040384   ;;  %vm50_vm1 = vcmask 138240   ;;  %vm687_vm2 = vcmask 130048   ;;  %s2354_s0 = inlined_call_operand.vmem [shape: f32[17,896], index: 0, kind: input, shape index: {}]   ;;  %s2355_s1 = inlined_call_operand.vmem [shape: f32[32,17], index: 1, kind: input, shape index: {}]   ;;  %s2356_s2 = inlined_call_operand.vmem [shape: f32[384,16], index: 2, kind: input, shape index: {}]   ;;  %s2357_s3 = inlined_call_operand.vmem [shape: f32[1,512], index: 3, kind: input, shape index: {}]   ;;  %s2358_s5 = inlined_call_operand.vmem [shape: f32[64,1], index: 5, kind: input, shape index: {}]   ;;  %s2359_s4 = inlined_call_operand.vmem [shape: f32[64,32], index: 4, kind: input, shape index: {}]   ;;  %s2360_s7 = inlined_call_operand.vmem [shape: f32[16,512], index: 7, kind: output, shape index: {1}]   ;;  %s2361_s6 = inlined_call_operand.vmem [shape: f32[64,512], index: 6, kind: output, shape index: {0}]  }
   0x1   :  { %v30_v0 = vld [vmem:[%s2354_s0 + $0x8] sm:$0xff]  ;;  %v37_v1 = vld [vmem:[%s2354_s0 + $0x40] sm:$0xff]  ;;  %v32_v2 = vld [vmem:[%s2354_s0 + $0x18] sm:$0xff]  ;;  %149 = vmatprep.mubr.f32.mxu0 %v1670_v3  ;;  %238 = vmatprep.mubr.f32.mxu1 %v1670_v3  ;;  %vm815_vm3 = vcmask 261120  }
   0x2   :  { %v1540_v4 = vpack.c.bf16 %v37_v1, %v30_v0  ;;  %v39_v5 = vld [vmem:[%s2354_s0 + $0x50] sm:$0xff]  ;;  %v29_v6 = vld [vmem:[%s2354_s0] sm:$0xff]  ;;  %v36_v7 = vld [vmem:[%s2354_s0 + $0x38] sm:$0xff] }
   0x3   :  { %v1544_v8 = vpack.c.bf16 %v39_v5, %v32_v2  ;;  %v1542_v9 = vpack.c.bf16 %v36_v7, %v29_v6  ;;  %v31_v10 = vld [vmem:[%s2354_s0 + $0x10] sm:$0xff]  ;;  %v38_v11 = vld [vmem:[%s2354_s0 + $0x48] sm:$0xff]  ;;  %v44_v12 = vld [vmem:[%s2354_s0 + $0x78] sm:$0x1] }
   0x4   :  { %1541 = vmatprep.subr.bf16.mxu0 %v1540_v4  ;;  %v1546_v13 = vpack.c.bf16 %v38_v11, %v31_v10  ;;  %v46_v14 = vld [vmem:[%s2354_s0 + $0x88] sm:$0x1]  ;;  %v43_v15 = vld [vmem:[%s2354_s0 + $0x70] sm:$0x1]  ;;  %v41_v17 = vld [vmem:[%s2354_s0 + $0x60] sm:$0xff] }
   0x5   :  { %1545 = vmatprep.subr.bf16.mxu1 %v1544_v8  ;;  %1543 = vmatpush1.bf16.msra.mxu0 %v1542_v9  ;;  %v34_v16 = vld [vmem:[%s2354_s0 + $0x28] sm:$0xff]  ;;  %v33_v18 = vld [vmem:[%s2354_s0 + $0x20] sm:$0xff]  ;;  %v40_v21 = vld [vmem:[%s2354_s0 + $0x58] sm:$0xff] }
   0x6   :  { %1547 = vmatpush1.bf16.msra.mxu1 %v1546_v13  ;;  %1376 = vmatprep.subr.msk.mxu0 %vm63_vm0, %v44_v12  ;;  %v45_v19 = vld [vmem:[%s2354_s0 + $0x80] sm:$0x1]  ;;  %v1548_v22 = vpack.c.bf16 %v41_v17, %v34_v16  ;;  %v35_v23 = vld [vmem:[%s2354_s0 + $0x30] sm:$0xff]  ;;  %v42_v24 = vld [vmem:[%s2354_s0 + $0x68] sm:$0xff]  ;;  %v1550_v25 = vpack.c.bf16 %v40_v21, %v33_v18 }
   0x7   :  { %1382 = vmatprep.subr.msk.mxu1 %vm63_vm0, %v46_v14  ;;  %v25_v20 = vld [vmem:[%s2355_s1] sm:$0xff]  ;;  %v1552_v26 = vpack.c.bf16 %v42_v24, %v35_v23  ;;  %v1779_v27 = vld [vmem:[%s2355_s1 + $0x8] sm:$0xff]  ;;  %v48_v28 = vld [vmem:[%s2354_s0 + $0x98] sm:$0x1] }
   0x8   :  { %v481_v29 = vld [vmem:[%s2356_s2 + $0x80] sm:$0xff]  ;;  %v482_v30 = vld [vmem:[%s2356_s2 + $0x88] sm:$0xff]  ;;  %v47_v31 = vld [vmem:[%s2354_s0 + $0x90] sm:$0x1] }
   0x9   :  { %1377 = vmatpush1.msk.msra.mxu0 %vm63_vm0, %v43_v15  ;;  %v49_v32 = vld [vmem:[%s2354_s0 + $0xa0] sm:$0x1]  ;;  %v1556_v33 = vpack.c.bf16 %v482_v30, %v481_v29  ;;  %v498_v35 = vld [vmem:[%s2356_s2 + $0x108] sm:$0xff]  ;;  %v27_v36 = vld [vmem:[%s2355_s1 + $0x10] sm:$0xff] }
   0xa   :  { %1383 = vmatpush1.msk.msra.mxu1 %vm63_vm0, %v45_v19  ;;  %1378 = vmatmul.mubr.msk.f32.vlgmr.msra.gmra.mrb[0].mxu0 %vm50_vm1, %v25_v20  ;;  %v497_v34 = vld [vmem:[%s2356_s2 + $0x100] sm:$0xff]  ;;  %v1823_v38 = vld [vmem:[%s2355_s1 + $0x18] sm:$0xff]  ;;  %v466_v40 = vld [vmem:[%s2356_s2 + $0x8] sm:$0xff] }
   0xb   :  { %1384 = vmatmul.mubr.msk.f32.vlgmr.msra.gmra.mrb[0].mxu1 %vm50_vm1, %v25_v20  ;;  %155 = vmatprep.mubr.f32.mxu0 %v1670_v3  ;;  %v1588_v37 = vpack.c.bf16 %v498_v35, %v497_v34  ;;  %v465_v39 = vld [vmem:[%s2356_s2] sm:$0xff]  ;;  %v483_v41 = vld [vmem:[%s2356_s2 + $0x90] sm:$0xff]  ;;  %v484_v42 = vld [vmem:[%s2356_s2 + $0x98] sm:$0xff] }
   0xc   :  { %244 = vmatprep.mubr.f32.mxu1 %v1670_v3  ;;  %1549 = vmatprep.subr.bf16.mxu0 %v1548_v22  ;;  %v499_v43 = vld [vmem:[%s2356_s2 + $0x110] sm:$0xff]  ;;  %v500_v44 = vld [vmem:[%s2356_s2 + $0x118] sm:$0xff]  ;;  %v1558_v45 = vpack.c.bf16 %v466_v40, %v465_v39  ;;  %v1560_v46 = vpack.c.bf16 %v484_v42, %v483_v41  ;;  %v485_v50 = vld [vmem:[%s2356_s2 + $0xa0] sm:$0xff]  ;;  %v1002_v42 = vlaneseq }
   0xd   :  { %1551 = vmatpush1.bf16.msra.mxu0 %v1550_v25  ;;  %1553 = vmatprep.subr.bf16.mxu1 %v1552_v26  ;;  %v467_v47 = vld [vmem:[%s2356_s2 + $0x10] sm:$0xff]  ;;  %v468_v48 = vld [vmem:[%s2356_s2 + $0x18] sm:$0xff]  ;;  %v1592_v49 = vpack.c.bf16 %v500_v44, %v499_v43  ;;  %v486_v51 = vld [vmem:[%s2356_s2 + $0xa8] sm:$0xff] }
   0xe   :  { %1379 = vmatmul.mubr.msk.f32.gmra.mrb[2].mxu0 %vm50_vm1, %v1779_v27  ;;  %1388 = vmatprep.subr.msk.mxu0 %vm63_vm0, %v48_v28  ;;  %v501_v52 = vld [vmem:[%s2356_s2 + $0x120] sm:$0xff]  ;;  %v502_v53 = vld [vmem:[%s2356_s2 + $0x128] sm:$0xff]  ;;  %v1562_v54 = vpack.c.bf16 %v468_v48, %v467_v47  ;;  %v1564_v55 = vpack.c.bf16 %v486_v51, %v485_v50  ;;  %v487_v59 = vld [vmem:[%s2356_s2 + $0xb0] sm:$0xff]  ;;  %v1979_v43 = vshrl.u32 %v1002_v42, 7 }
   0xf   :  { %1385 = vmatmul.mubr.msk.f32.gmra.mrb[2].mxu1 %vm50_vm1, %v1779_v27  ;;  %161 = vmatprep.mubr.f32.mxu0 %v1670_v3  ;;  %v469_v56 = vld [vmem:[%s2356_s2 + $0x20] sm:$0xff]  ;;  %v470_v57 = vld [vmem:[%s2356_s2 + $0x28] sm:$0xff]  ;;  %v1596_v58 = vpack.c.bf16 %v502_v53, %v501_v52  ;;  %v488_v60 = vld [vmem:[%s2356_s2 + $0xb8] sm:$0xff] }
  0x10   :  { %250 = vmatprep.mubr.f32.mxu1 %v1670_v3  ;;  %1555 = vmatpush3.bf16.msra.mxu1 %v1552_v26  ;;  %v503_v61 = vld [vmem:[%s2356_s2 + $0x130] sm:$0xff]  ;;  %v504_v62 = vld [vmem:[%s2356_s2 + $0x138] sm:$0xff]  ;;  %v1566_v63 = vpack.c.bf16 %v470_v57, %v469_v56  ;;  %v1568_v0 = vpack.c.bf16 %v488_v60, %v487_v59  ;;  %v489_v5 = vld [vmem:[%s2356_s2 + $0xc0] sm:$0xff]  ;;  %v1004_v47 = vsub.s32 0, %v1979_v43 }
  0x11   :  { %1389 = vmatpush1.msk.msra.mxu0 %vm63_vm0, %v47_v31  ;;  %1494 = vmatprep.subr.msk.mxu1 %vm63_vm0, %v49_v32  ;;  %v471_v1 = vld [vmem:[%s2356_s2 + $0x30] sm:$0xff]  ;;  %v472_v2 = vld [vmem:[%s2356_s2 + $0x38] sm:$0xff]  ;;  %v1600_v4 = vpack.c.bf16 %v504_v62, %v503_v61  ;;  %v490_v6 = vld [vmem:[%s2356_s2 + $0xc8] sm:$0xff] }
  0x12   :  { %1380 = vmatmul.mubr.msk.f32.gmra.mrb[4].mxu0 %vm50_vm1, %v27_v36  ;;  %1557 = vmatprep.subr.bf16.mxu0 %v1556_v33  ;;  %v505_v7 = vld [vmem:[%s2356_s2 + $0x140] sm:$0xff]  ;;  %v506_v8 = vld [vmem:[%s2356_s2 + $0x148] sm:$0xff]  ;;  %v1570_v9 = vpack.c.bf16 %v472_v2, %v471_v1  ;;  %v1572_v10 = vpack.c.bf16 %v490_v6, %v489_v5  ;;  %v491_v14 = vld [vmem:[%s2356_s2 + $0xd0] sm:$0xff] }
  0x13   :  { %1386 = vmatmul.mubr.msk.f32.gmra.mrb[4].mxu1 %vm50_vm1, %v27_v36  ;;  %167 = vmatprep.mubr.f32.mxu0 %v1670_v3  ;;  %v473_v11 = vld [vmem:[%s2356_s2 + $0x40] sm:$0xff]  ;;  %v474_v12 = vld [vmem:[%s2356_s2 + $0x48] sm:$0xff]  ;;  %v1604_v13 = vpack.c.bf16 %v506_v8, %v505_v7  ;;  %v492_v15 = vld [vmem:[%s2356_s2 + $0xd8] sm:$0xff] }
  0x14   :  { %256 = vmatprep.mubr.f32.mxu1 %v1670_v3  ;;  %1495 = vmatpush3.msk.msra.mxu1 %vm63_vm0, %v49_v32  ;;  %v507_v16 = vld [vmem:[%s2356_s2 + $0x150] sm:$0xff]  ;;  %v508_v17 = vld [vmem:[%s2356_s2 + $0x158] sm:$0xff]  ;;  %v1574_v18 = vpack.c.bf16 %v474_v12, %v473_v11  ;;  %v1576_v19 = vpack.c.bf16 %v492_v15, %v491_v14  ;;  %v493_v23 = vld [vmem:[%s2356_s2 + $0xe0] sm:$0xff]  ;;  %v1008_v15 = vsub.s32 1, %v1979_v43 }
  0x15   :  { %1589 = vmatprep.subr.bf16.mxu1 %v1588_v37  ;;  %v476_v21 = vld [vmem:[%s2356_s2 + $0x58] sm:$0xff]  ;;  %v1608_v22 = vpack.c.bf16 %v508_v17, %v507_v16  ;;  %v494_v24 = vld [vmem:[%s2356_s2 + $0xe8] sm:$0xff]  ;;  %v509_v25 = vld [vmem:[%s2356_s2 + $0x160] sm:$0xff] }
  0x16   :  { %1381 = vmatmul.mubr.msk.f32.gmra.mrb[6].mxu0 %vm50_vm1, %v1823_v38  ;;  %v510_v26 = vld [vmem:[%s2356_s2 + $0x168] sm:$0xff]  ;;  %v1580_v28 = vpack.c.bf16 %v494_v24, %v493_v23  ;;  %v477_v29 = vld [vmem:[%s2356_s2 + $0x60] sm:$0xff]  ;;  %v495_v33 = vld [vmem:[%s2356_s2 + $0xf0] sm:$0xff]  ;;  %v1016_v23 = vsub.s32 3, %v1979_v43 }
  0x17   :  { %1387 = vmatmul.mubr.msk.f32.gmra.mrb[6].mxu1 %vm50_vm1, %v1823_v38  ;;  %327 = vmatprep.mubr.f32.mxu0 %v1670_v3  ;;  %v478_v30 = vld [vmem:[%s2356_s2 + $0x68] sm:$0xff]  ;;  %v1612_v31 = vpack.c.bf16 %v510_v26, %v509_v25  ;;  %v496_v34 = vld [vmem:[%s2356_s2 + $0xf8] sm:$0xff]  ;;  %v511_v39 = vld [vmem:[%s2356_s2 + $0x170] sm:$0xff] }
  0x18   :  { %1496 = vmatprep.mubr.msk.f32.mxu1 %vm50_vm1, %v25_v20  ;;  %v1582_v32 = vpack.c.bf16 %v478_v30, %v477_v29  ;;  %v1584_v35 = vpack.c.bf16 %v496_v34, %v495_v33  ;;  %v512_v40 = vld [vmem:[%s2356_s2 + $0x178] sm:$0xff]  ;;  %v1985_v51 = vld [vmem:[%s2357_s3] sm:$0xf] }
  0x19   :  { %v1616_v41 = vpack.c.bf16 %v512_v40, %v511_v39 }
  0x1a   :  { %1390 = vmatmul.mubr.msk.f32.vlgmr.msra.gmra.mrb[8].mxu0 %vm50_vm1, %v25_v20  ;;  %v475_v20 = vld [vmem:[%s2356_s2 + $0x50] sm:$0xff] }
  0x1b   :  { %333 = vmatprep.mubr.f32.mxu0 %v1670_v3  ;;  %1497 = vmatmul.mubr.msk.f32.vlgmr.msra.gmra.mrb[8].mxu1 %vm50_vm1, %v1779_v27 }
  0x1c   :  { %1499 = vmatprep.mubr.msk.f32.mxu1 %vm50_vm1, %v27_v36  ;;  %1559 = vmatpush3.bf16.msra.mxu0 %v1558_v45 }
  0x1d   :  { %1591 = vmatpush3.bf16.msra.mxu1 %v1588_v37  ;;  %1561 = vmatprep.subr.bf16.mxu0 %v1560_v46  ;;  %v480_v37 = vld [vmem:[%s2356_s2 + $0x78] sm:$0xff] }
  0x1e   :  { %1391 = vmatmul.mubr.msk.f32.gmra.mrb[10].mxu0 %vm50_vm1, %v1779_v27  ;;  %1593 = vmatprep.subr.bf16.mxu1 %v1592_v49  ;;  %v1578_v27 = vpack.c.bf16 %v476_v21, %v475_v20 }
  0x1f   :  { %339 = vmatprep.mubr.f32.mxu0 %v1670_v3  ;;  %1500 = vmatmul.mubr.msk.f32.gmra.mrb[10].mxu1 %vm50_vm1, %v1823_v38 }
  0x20   :  { %1563 = vmatpush3.bf16.msra.mxu0 %v1562_v54 }
  0x21   :  { %1595 = vmatpush3.bf16.msra.mxu1 %v1592_v49  ;;  %1565 = vmatprep.subr.bf16.mxu0 %v1564_v55  ;;  %v1005_v55 = vrot.slane %v1985_v51, %v1004_v47 }
  0x22   :  { %1392 = vmatmul.mubr.msk.f32.gmra.mrb[12].mxu0 %vm50_vm1, %v27_v36  ;;  %1597 = vmatprep.subr.bf16.mxu1 %v1596_v58  ;;  %v479_v36 = vld [vmem:[%s2356_s2 + $0x70] sm:$0xff] }
  0x23   :  { %345 = vmatprep.mubr.f32.mxu0 %v1670_v3 }
  0x24   :  { %1567 = vmatpush3.bf16.msra.mxu0 %v1566_v63 }
  0x25   :  { %1599 = vmatpush3.bf16.msra.mxu1 %v1596_v58  ;;  %1569 = vmatprep.subr.bf16.mxu0 %v1568_v0 }
  0x26   :  { %1393 = vmatmul.mubr.msk.f32.gmra.mrb[14].mxu0 %vm50_vm1, %v1823_v38  ;;  %1601 = vmatprep.subr.bf16.mxu1 %v1600_v4  ;;  %v1586_v38 = vpack.c.bf16 %v480_v37, %v479_v36 }
  0x28   :  { %1571 = vmatpush3.bf16.msra.mxu0 %v1570_v9 }
  0x29   :  { %1603 = vmatpush3.bf16.msra.mxu1 %v1600_v4  ;;  %1573 = vmatprep.subr.bf16.mxu0 %v1572_v10 }
  0x2a   :  { %1605 = vmatprep.subr.bf16.mxu1 %v1604_v13 }
  0x2c   :  { %1575 = vmatpush3.bf16.msra.mxu0 %v1574_v18 }
  0x2d   :  { %1607 = vmatpush3.bf16.msra.mxu1 %v1604_v13  ;;  %1577 = vmatprep.subr.bf16.mxu0 %v1576_v19 }
  0x2e   :  { %1609 = vmatprep.subr.bf16.mxu1 %v1608_v22 }
  0x30   :  { %1579 = vmatpush3.bf16.msra.mxu0 %v1578_v27 }
  0x31   :  { %1611 = vmatpush3.bf16.msra.mxu1 %v1608_v22  ;;  %1581 = vmatprep.subr.bf16.mxu0 %v1580_v28  ;;  %v1012_v22 = vsub.s32 2, %v1979_v43  ;;  %v2014_v28 = vrot.slane %v1985_v51, %v1008_v15 }
  0x32   :  { %1613 = vmatprep.subr.bf16.mxu1 %v1612_v31 }
  0x33   :  { %v1013_v36 = vrot.slane %v1985_v51, %v1012_v22 }
  0x34   :  { %1583 = vmatpush3.bf16.msra.mxu0 %v1582_v32 }
  0x35   :  { %1615 = vmatpush3.bf16.msra.mxu1 %v1612_v31  ;;  %1585 = vmatprep.subr.bf16.mxu0 %v1584_v35 }
  0x36   :  { %1617 = vmatprep.subr.bf16.mxu1 %v1616_v41 }
  0x38   :  { %1587 = vmatpush3.bf16.msra.mxu0 %v1586_v38  ;;  %v1017_v38 = vrot.slane %v1985_v51, %v1016_v23 }
  0x39   :  { %1619 = vmatpush3.bf16.msra.mxu1 %v1616_v41 }
  0xdd   :  { %v151_v44 = vpop.f32.mrb[0].mxu0 }
  0xde   :  { %v153_v45 = vpop.f32.mrb[1].mxu0  ;;  %v240_v46 = vpop.f32.mrb[0].mxu1  ;;  %v437_v52 = vmax.f32 %v151_v44, 0.0 }
  0xdf   :  { %v438_v48 = vmax.f32 %v153_v45, 0.0  ;;  %v439_v49 = vmax.f32 %v240_v46, 0.0  ;;  %v242_v50 = vpop.f32.mrb[1].mxu1 }
  0xe0   :  { %v1987_v54 = vmax.f32 %v242_v50, 0.0 }
  0xe1   :  { %v157_v53 = vpop.f32.mrb[2].mxu0  ;;  %577 = vmatprep.mubr.f32.mxu0 %v438_v48  ;;  %1534 = vmatprep.mubr.f32.mxu1 %v439_v49 }
  0xe2   :  { %v246_v56 = vpop.f32.mrb[2].mxu1  ;;  %v159_v57 = vpop.f32.mrb[3].mxu0  ;;  %578 = vmatmul.mubr.f32.vlgmr.msra.gmra.mrb[16].mxu0 %v437_v52  ;;  %v444_v61 = vmax.f32 %v157_v53, 0.0  ;;  %v707_v0 = vmul.f32 %v1987_v54, %v1987_v54  ;;  %v1995_v1 = vmul.f32 %v1005_v55, %v1987_v54 }
  0xe3   :  { %v446_v58 = vmax.f32 %v246_v56, 0.0  ;;  %v445_v59 = vmax.f32 %v159_v57, 0.0  ;;  %v248_v60 = vpop.f32.mrb[3].mxu1 }
  0xe4   :  { %v1990_v62 = vmax.f32 %v248_v60, 0.0 }
  0xe5   :  { %1535 = vmatmul.mubr.f32.vlgmr.msra.gmra.mrb[12].mxu1 %v446_v58  ;;  %v163_v63 = vpop.f32.mrb[4].mxu0  ;;  %582 = vmatprep.mubr.f32.mxu0 %v445_v59 }
  0xe6   :  { %v711_v2 = vmul.f32 %v1990_v62, %v1990_v62  ;;  %v2000_v4 = vmul.f32 %v1005_v55, %v1990_v62  ;;  %v252_v5 = vpop.f32.mrb[4].mxu1  ;;  %v165_v6 = vpop.f32.mrb[5].mxu0  ;;  %583 = vmatmul.mubr.f32.gmra.mrb[18].mxu0 %v444_v61  ;;  %v451_v12 = vmax.f32 %v163_v63, 0.0 }
  0xe7   :  { %v453_v7 = vmax.f32 %v252_v5, 0.0  ;;  %v452_v8 = vmax.f32 %v165_v6, 0.0  ;;  %v254_v9 = vpop.f32.mrb[5].mxu1 }
  0xe8   :  { %v723_v10 = vadd.f32 %v711_v2, %v707_v0  ;;  %v1638_v11 = vpack.c.bf16 %v2000_v4, %v1995_v1  ;;  %v2004_v13 = vmax.f32 %v254_v9, 0.0  ;;  %v992_v1 = vld [vmem:[%s2359_s4] sm:$0xff]  ;;  %v993_v4 = vld [vmem:[%s2359_s4 + $0x8] sm:$0xff] }
  0xe9   :  { %v169_v14 = vpop.f32.mrb[6].mxu0  ;;  %587 = vmatprep.mubr.f32.mxu0 %v452_v8  ;;  %1537 = vmatprep.mubr.f32.mxu1 %v453_v7 }
  0xea   :  { %v715_v16 = vmul.f32 %v2004_v13, %v2004_v13  ;;  %v258_v17 = vpop.f32.mrb[6].mxu1  ;;  %v171_v18 = vpop.f32.mrb[7].mxu0  ;;  %588 = vmatmul.mubr.f32.gmra.mrb[20].mxu0 %v451_v12  ;;  %v458_v25 = vmax.f32 %v169_v14, 0.0  ;;  %v2017_v29 = vmul.f32 %v1005_v55, %v2004_v13 }
  0xeb   :  { %v460_v19 = vmax.f32 %v258_v17, 0.0  ;;  %v459_v20 = vmax.f32 %v171_v18, 0.0  ;;  %v260_v21 = vpop.f32.mrb[7].mxu1 }
  0xec   :  { %v724_v24 = vadd.f32 %v723_v10, %v715_v16  ;;  %v2011_v26 = vmax.f32 %v260_v21, 0.0 }
  0xed   :  { %1538 = vmatmul.mubr.f32.gmra.mrb[14].mxu1 %v460_v19  ;;  %592 = vmatprep.mubr.f32.mxu0 %v459_v20  ;;  %v329_v27 = vpop.f32.mrb[8].mxu0 }
  0xee   :  { %v719_v30 = vmul.f32 %v2011_v26, %v2011_v26  ;;  %v2022_v31 = vmul.f32 %v1005_v55, %v2011_v26  ;;  %593 = vmatmul.mubr.f32.gmra.mrb[22].mxu0 %v458_v25  ;;  %v2024_v32 = vmax.f32 %v329_v27, 0.0  ;;  %v331_v33 = vpop.f32.mrb[9].mxu0  ;;  %v1498_v34 = vpop.f32.mrb[8].mxu1  ;;  %886 = vmatprep.mubr.f32.mxu1 %v1670_v3 }
  0xef   :  { %v2027_v35 = vmax.f32 %v331_v33, 0.0  ;;  %v2030_v37 = vmax.f32 %v1498_v34, 0.0  ;;  %v418_v39 = vpop.f32.mrb[9].mxu1  ;;  %963 = vmatprep.mubr.f32.mxu0 %v1670_v3 }
  0xf0   :  { %v725_v40 = vadd.f32 %v724_v24, %v719_v30  ;;  %v1642_v41 = vpack.c.bf16 %v2022_v31, %v2017_v29  ;;  %v708_v42 = vmul.f32 %v2024_v32, %v2024_v32  ;;  %v2040_v43 = vmul.f32 %v2014_v28, %v2024_v32  ;;  %v995_v29 = vld [vmem:[%s2359_s4 + $0x18] sm:$0xff]  ;;  %v996_v31 = vld [vmem:[%s2359_s4 + $0x20] sm:$0xff] }
  0xf1   :  { %v335_v44 = vpop.f32.mrb[10].mxu0  ;;  %v714_v48 = vmul.f32 %v2030_v37, %v2030_v37  ;;  %v2046_v49 = vmax.f32 %v418_v39, 0.0  ;;  %v709_v51 = vmul.f32 %v2027_v35, %v2027_v35  ;;  %v1024_v52 = vmul.f32 %v1013_v36, %v2027_v35 }
  0xf2   :  { %v726_v45 = vrot.slane %v725_v40, 4  ;;  %v2042_v46 = vmax.f32 %v335_v44, 0.0  ;;  %v337_v47 = vpop.f32.mrb[11].mxu0  ;;  %v1501_v50 = vpop.f32.mrb[10].mxu1  ;;  %v1029_v55 = vmul.f32 %v1017_v38, %v2030_v37 }
  0xf3   :  { %v2051_v53 = vmax.f32 %v337_v47, 0.0  ;;  %v428_v56 = vpop.f32.mrb[11].mxu1  ;;  %v710_v59 = vmul.f32 %v2046_v49, %v2046_v49  ;;  %v2058_v60 = vmax.f32 %v1501_v50, 0.0  ;;  %v1025_v5 = vmul.f32 %v1017_v38, %v2046_v49 }
  0xf4   :  { %v727_v57 = vadd.f32 %v726_v45, %v725_v40  ;;  %v712_v58 = vmul.f32 %v2042_v46, %v2042_v46  ;;  %v2062_v61 = vmul.f32 %v2014_v28, %v2042_v46  ;;  %v2083_v20 = vmax.f32 %v428_v56, 0.0 }
  0xf5   :  { %v713_v63 = vmul.f32 %v2051_v53, %v2051_v53  ;;  %v1028_v0 = vmul.f32 %v1013_v36, %v2051_v53  ;;  %v341_v2 = vpop.f32.mrb[12].mxu0  ;;  %v750_v10 = vadd.f32 %v714_v48, %v710_v59  ;;  %v2075_v16 = vmul.f32 %v1017_v38, %v2058_v60 }
  0xf6   :  { %v728_v6 = vrot.slane %v727_v57, 2  ;;  %v732_v7 = vadd.f32 %v712_v58, %v708_v42  ;;  %v2068_v8 = vmax.f32 %v341_v2, 0.0  ;;  %v343_v9 = vpop.f32.mrb[13].mxu0  ;;  %v722_v23 = vmul.f32 %v2058_v60, %v2058_v60 }
  0xf7   :  { %v741_v12 = vadd.f32 %v713_v63, %v709_v51  ;;  %v2070_v14 = vpack.c.bf16 %v1028_v0, %v1024_v52  ;;  %v2072_v15 = vmax.f32 %v343_v9, 0.0  ;;  %v1636_v24 = vpack.c.bf16 %v2062_v61, %v2040_v43 }
  0xf8   :  { %v729_v17 = vadd.f32 %v728_v6, %v727_v57  ;;  %v716_v18 = vmul.f32 %v2068_v8, %v2068_v8  ;;  %v2081_v19 = vmul.f32 %v2014_v28, %v2068_v8  ;;  %v2091_v25 = vpack.c.bf16 %v1029_v55, %v1025_v5 }
  0xf9   :  { %v717_v21 = vmul.f32 %v2072_v15, %v2072_v15  ;;  %v347_v22 = vpop.f32.mrb[14].mxu0  ;;  %v718_v34 = vmul.f32 %v2083_v20, %v2083_v20  ;;  %v1032_v42 = vmul.f32 %v1013_v36, %v2072_v15  ;;  %v2097_v44 = vmul.f32 %v1017_v38, %v2083_v20 }
  0xfa   :  { %v730_v27 = vrot.slane %v729_v17, 1  ;;  %v733_v30 = vadd.f32 %v732_v7, %v716_v18  ;;  %v462_v33 = vmax.f32 %v347_v22, 0.0  ;;  %v349_v39 = vpop.f32.mrb[15].mxu0 }
  0xfb   :  { %v742_v40 = vadd.f32 %v741_v12, %v717_v21  ;;  %v463_v45 = vmax.f32 %v349_v39, 0.0  ;;  %v751_v51 = vadd.f32 %v750_v10, %v718_v34 }
  0xfc   :  { %v731_v47 = vadd.f32 %v730_v27, %v729_v17  ;;  %v720_v48 = vmul.f32 %v462_v33, %v462_v33  ;;  %v2100_v50 = vmul.f32 %v2014_v28, %v462_v33 }
  0xfd   :  { %v721_v52 = vmul.f32 %v463_v45, %v463_v45  ;;  %v1036_v55 = vmul.f32 %v1013_v36, %v463_v45  ;;  %v752_v58 = vadd.f32 %v751_v51, %v722_v23 }
  0xfe   :  { %v759_v56 = vmax.f32 %v731_v47, 1e-24  ;;  %v734_v57 = vadd.f32 %v733_v30, %v720_v48 }
  0xff   :  { %v743_v59 = vadd.f32 %v742_v40, %v721_v52  ;;  %v2102_v63 = vpack.c.bf16 %v1036_v55, %v1032_v42  ;;  %v753_v2 = vrot.slane %v752_v58, 4 }
 0x100   :  { %1660 = vrsqrt.f32 %v759_v56  ;;  %v735_v0 = vrot.slane %v734_v57, 4 }
 0x101   :  { %v744_v38 = vrot.slane %v743_v59, 4  ;;  %v754_v6 = vadd.f32 %v753_v2, %v752_v58 }
 0x102   :  { %v736_v5 = vadd.f32 %v735_v0, %v734_v57 }
 0x103   :  { %v745_v7 = vadd.f32 %v744_v38, %v743_v59  ;;  %v755_v12 = vrot.slane %v754_v6, 2 }
 0x104   :  { %v737_v9 = vrot.slane %v736_v5, 2 }
 0x105   :  { %v746_v28 = vrot.slane %v745_v7, 2  ;;  %v756_v10 = vadd.f32 %v755_v12, %v754_v6 }
 0x106   :  { %v738_v17 = vadd.f32 %v737_v9, %v736_v5 }
 0x107   :  { %v747_v18 = vadd.f32 %v746_v28, %v745_v7  ;;  %v757_v21 = vrot.slane %v756_v10, 1 }
 0x108   :  { %v739_v36 = vrot.slane %v738_v17, 1 }
 0x109   :  { %v748_v22 = vrot.slane %v747_v18, 1  ;;  %v758_v30 = vadd.f32 %v757_v21, %v756_v10 }
 0x10a   :  { %v1661_v23 = vpop.eup %1660  ;;  %v740_v27 = vadd.f32 %v739_v36, %v738_v17 }
 0x10b   :  { %v775_v34 = vmul.f32 %v1661_v23, %v2004_v13  ;;  %v779_v39 = vmul.f32 %v1661_v23, %v2011_v26  ;;  %v767_v40 = vmul.f32 %v1661_v23, %v1987_v54  ;;  %v771_v42 = vmul.f32 %v1661_v23, %v1990_v62 }
 0x10c   :  { %v760_v47 = vmax.f32 %v740_v27, 1e-24  ;;  %v762_v48 = vmax.f32 %v758_v30, 1e-24  ;;  %v749_v51 = vadd.f32 %v748_v22, %v747_v18 }
 0x10d   :  { %v1626_v52 = vpack.c.bf16 %v779_v39, %v775_v34  ;;  %v1622_v55 = vpack.c.bf16 %v771_v42, %v767_v40 }
 0x10e   :  { %1662 = vrsqrt.f32 %v760_v47  ;;  %v761_v56 = vmax.f32 %v749_v51, 1e-24 }
 0x10f   :  { %1664 = vrsqrt.f32 %v762_v48 }
 0x110   :  { %1666 = vrsqrt.f32 %v761_v56 }
 0x118   :  { %v1663_v57 = vpop.eup %1662 }
 0x119   :  { %v1665_v58 = vpop.eup %1664  ;;  %v780_v59 = vmul.f32 %v1663_v57, %v462_v33  ;;  %v768_v13 = vmul.f32 %v1663_v57, %v2024_v32  ;;  %v772_v26 = vmul.f32 %v1663_v57, %v2042_v46  ;;  %v776_v54 = vmul.f32 %v1663_v57, %v2068_v8 }
 0x11a   :  { %v1667_v0 = vpop.eup %1666  ;;  %v778_v62 = vmul.f32 %v1665_v58, %v2083_v20  ;;  %v770_v2 = vmul.f32 %v1665_v58, %v2046_v49  ;;  %v774_v38 = vmul.f32 %v1665_v58, %v2030_v37  ;;  %v782_v5 = vmul.f32 %v1665_v58, %v2058_v60 }
 0x11b   :  { %v1620_v6 = vpack.c.bf16 %v772_v26, %v768_v13  ;;  %v1624_v7 = vpack.c.bf16 %v780_v59, %v776_v54  ;;  %v777_v9 = vmul.f32 %v1667_v0, %v2072_v15  ;;  %v781_v33 = vmul.f32 %v1667_v0, %v463_v45 }
 0x11c   :  { %v1628_v12 = vpack.c.bf16 %v774_v38, %v770_v2  ;;  %v769_v32 = vmul.f32 %v1667_v0, %v2027_v35  ;;  %v773_v46 = vmul.f32 %v1667_v0, %v2051_v53  ;;  %v1632_v8 = vpack.c.bf16 %v782_v5, %v778_v62 }
 0x11d   :  { %1621 = vmatprep.subr.bf16.mxu1 %v1620_v6  ;;  %v1634_v28 = vpack.c.bf16 %v781_v33, %v777_v9  ;;  %v1640_v35 = vpack.c.bf16 %v2100_v50, %v2081_v19  ;;  %v2126_v37 = vpack.c.bf16 %v2075_v16, %v2097_v44  ;;  %v1671_v33 = vmov 0   ;;  %v999_v19 = vld [vmem:[%s2359_s4 + $0x38] sm:$0xff] }
 0x11e   :  { %1623 = vmatpush1.bf16.msra.mxu1 %v1622_v55  ;;  %1629 = vmatprep.subr.bf16.mxu0 %v1628_v12  ;;  %v1630_v49 = vpack.c.bf16 %v773_v46, %v769_v32  ;;  %v1038_v12 = vld [vmem:[%s2358_s5] sm:$0xff]  ;;  %v1039_v32 = vld [vmem:[%s2358_s5 + $0x8] sm:$0xff]  ;;  %v1040_v46 = vld [vmem:[%s2358_s5 + $0x10] sm:$0xff] }
 0x11f   :  { %1625 = vmatprep.subr.bf16.mxu1 %v1624_v7  ;;  %1658 = vset.pattern.permute.xlu1 %v1671_v33 }
 0x120   :  { %1631 = vmatpush1.bf16.msra.mxu0 %v1630_v49  ;;  %1048 = vperm.xlu1 %1658, %v1038_v12   ;;  %v1043_v49 = vld [vmem:[%s2358_s5 + $0x28] sm:$0xff] }
 0x121   :  { %1633 = vmatprep.subr.bf16.mxu0 %v1632_v8  ;;  %v1042_v8 = vld [vmem:[%s2358_s5 + $0x20] sm:$0xff] }
 0x122   :  { %1627 = vmatpush1.bf16.msra.mxu1 %v1626_v52 }
 0x123   :  { %1637 = vmatprep.subr.bf16.mxu1 %v1636_v24 }
 0x124   :  { %1635 = vmatpush1.bf16.msra.mxu0 %v1634_v28  ;;  %1053 = vperm.xlu1 %1658, %v1039_v32   ;;  %v1041_v28 = vld [vmem:[%s2358_s5 + $0x18] sm:$0xff] }
 0x125   :  { %1645 = vmatprep.subr.bf16.mxu0 %v2091_v25 }
 0x128   :  { %1058 = vperm.xlu1 %1658, %v1040_v46  }
 0x12c   :  { %1063 = vperm.xlu1 %1658, %v1041_v28  }
 0x130   :  { %1073 = vperm.xlu1 %1658, %v1043_v49  }
 0x1b5   :  { %v1458_v53 = vpop.f32.mrb[16].mxu0 }
 0x1b6   :  { %v1459_v60 = vpop.f32.mrb[17].mxu0 }
 0x1b7   :  { %v1460_v15 = vadd.f32 %v1459_v60, %v1458_v53  ;;  %v1044_v53 = vld [vmem:[%s2358_s5 + $0x30] sm:$0xff]  ;;  %v1045_v60 = vld [vmem:[%s2358_s5 + $0x38] sm:$0xff] }
 0x1b8   :  { %v1536_v20 = vpop.f32.mrb[12].mxu1  ;;  %1078 = vperm.xlu1 %1658, %v1044_v53  }
 0x1b9   :  { %v664_v45 = vpop.f32.mrb[13].mxu1  ;;  %v1461_v17 = vpop.f32.mrb[18].mxu0 }
 0x1ba   :  { %v665_v10 = vadd.f32 %v1460_v15, %v664_v45  ;;  %v1462_v18 = vpop.f32.mrb[19].mxu0 }
 0x1bb   :  { %v1463_v43 = vadd.f32 %v1462_v18, %v1461_v17 }
 0x1bc   :  { %v683_v61 = vmul.f32 %v665_v10, %v665_v10  ;;  %1083 = vperm.xlu1 %1658, %v1045_v60  }
 0x1bd   :  { %v670_v24 = vadd.f32 %v1536_v20, %v1463_v43  ;;  %v1464_v36 = vpop.f32.mrb[20].mxu0 }
 0x1be   :  { %v1465_v21 = vpop.f32.mrb[21].mxu0  ;;  %v688_v16 = vsel %vm687_vm2, %v683_v61, 0.0 }
 0x1bf   :  { %v684_v22 = vmul.f32 %v670_v24, %v670_v24  ;;  %v1466_v23 = vadd.f32 %v1465_v21, %v1464_v36 }
 0x1c0   :  { %v1539_v27 = vpop.f32.mrb[14].mxu1 }
 0x1c1   :  { %v689_v44 = vsel %vm687_vm2, %v684_v22, 0.0  ;;  %v674_v30 = vpop.f32.mrb[15].mxu1  ;;  %v1467_v34 = vpop.f32.mrb[22].mxu0 }
 0x1c2   :  { %v675_v39 = vadd.f32 %v1466_v23, %v674_v30  ;;  %v690_v40 = vadd.f32 %v689_v44, %v688_v16  ;;  %v1468_v42 = vpop.f32.mrb[23].mxu0 }
 0x1c3   :  { %v1469_v47 = vadd.f32 %v1468_v42, %v1467_v34 }
 0x1c4   :  { %v685_v48 = vmul.f32 %v675_v39, %v675_v39 }
 0x1c5   :  { %v680_v51 = vadd.f32 %v1539_v27, %v1469_v47 }
 0x1c6   :  { %v691_v52 = vsel %vm687_vm2, %v685_v48, 0.0 }
 0x1c7   :  { %v692_v55 = vadd.f32 %v691_v52, %v690_v40  ;;  %v686_v56 = vmul.f32 %v680_v51, %v680_v51 }
 0x1c9   :  { %v693_v57 = vsel %vm687_vm2, %v686_v56, 0.0 }
 0x1ca   :  { %v694_v58 = vadd.f32 %v693_v57, %v692_v55 }
 0x1cc   :  { %v695_v59 = vrot.slane %v694_v58, 4 }
 0x1ce   :  { %v696_v13 = vadd.f32 %v695_v59, %v694_v58 }
 0x1d0   :  { %v697_v26 = vrot.slane %v696_v13, 2 }
 0x1d2   :  { %v698_v54 = vadd.f32 %v697_v26, %v696_v13 }
 0x1d4   :  { %v699_v0 = vrot.slane %v698_v54, 1 }
 0x1d6   :  { %v700_v62 = vadd.f32 %v699_v0, %v698_v54 }
 0x1d8   :  { %v701_v2 = vmax.f32 %v700_v62, 1e-24 }
 0x1da   :  { %1668 = vrsqrt.f32 %v701_v2 }
 0x1e4   :  { %v1669_v38 = vpop.eup %1668 }
 0x1e5   :  { %v703_v5 = vmul.f32 %v1669_v38, %v665_v10  ;;  %v704_v6 = vmul.f32 %v1669_v38, %v670_v24  ;;  %v705_v7 = vmul.f32 %v1669_v38, %v675_v39  ;;  %v706_v9 = vmul.f32 %v1669_v38, %v680_v51 }
 0x1e7   :  { %783 = vxpose.xlu0.b32.start [1/4] (short) (narrow) %v703_v5, 16 }
 0x1eb   :  { %784 = vxpose.xlu0.b32.cont [2/4] (short) (narrow) %v704_v6, 16 }
 0x1ef   :  { %785 = vxpose.xlu0.b32.cont [3/4] (short) (narrow) %v705_v7, 16 }
 0x1f3   :  { %786 = vxpose.xlu0.b32.end [4/4] (short) (narrow) %v706_v9, 16 }
 0x21c   :  { %1659 = vset.pattern.permute.xlu0 %v1671_v33 }
 0x21d   :  { %1068 = vperm.xlu0 %1659, %v1042_v8  }
 0x267   :  { %v799_v15 = vpop.trf.xlu0 }
 0x268   :  { %1399 = vmatmul.mubr.msk.f32.vlgmr.msra.gmra.mrb[16].mxu1 %vm815_vm3, %v799_v15  ;;  %1401 = vmatmul.mubr.msk.f32.vlgmr.msra.gmra.mrb[24].mxu0 %vm815_vm3, %v799_v15 }
 0x269   :  { %1639 = vmatpush1.bf16.msra.mxu1 %v1638_v11  ;;  %1647 = vmatpush1.bf16.msra.mxu0 %v2070_v14  ;;  %v994_v11 = vld [vmem:[%s2359_s4 + $0x10] sm:$0xff] }
 0x26a   :  { %1641 = vmatprep.subr.bf16.mxu1 %v1640_v35  ;;  %1649 = vmatprep.subr.bf16.mxu0 %v2126_v37 }
 0x26b   :  { %892 = vmatprep.mubr.f32.mxu1 %v1670_v3  ;;  %v800_v20 = vpop.trf.xlu0  ;;  %969 = vmatprep.mubr.f32.mxu0 %v1670_v3 }
 0x26c   :  { %1400 = vmatmul.mubr.msk.f32.gmra.mrb[18].mxu1 %vm815_vm3, %v800_v20  ;;  %1402 = vmatmul.mubr.msk.f32.gmra.mrb[26].mxu0 %vm815_vm3, %v800_v20 }
 0x26d   :  { %1643 = vmatpush1.bf16.msra.mxu1 %v1642_v41  ;;  %1651 = vmatpush1.bf16.msra.mxu0 %v2102_v63  ;;  %v997_v41 = vld [vmem:[%s2359_s4 + $0x28] sm:$0xff] }
 0x26e   :  { %1652 = vmatprep.subr.bf16.mxu1 %v2091_v25  ;;  %1174 = vmatprep.mubr.f32.mxu1 %v1670_v3  ;;  %v1049_v25 = vpop.permute.xlu1 %1048 }
 0x26f   :  { %1287 = vmatprep.mubr.f32.mxu0 %v1670_v3 }
 0x270   :  { %1403 = vmatmul.mubr.msk.f32.vlgmr.msra.gmra.mrb[20].mxu1 %vm815_vm3, %v992_v1  ;;  %1411 = vmatmul.mubr.msk.f32.vlgmr.msra.gmra.mrb[28].mxu0 %vm815_vm3, %v992_v1 }
 0x271   :  { %1654 = vmatpush1.bf16.msra.mxu1 %v2070_v14  ;;  %1180 = vmatprep.mubr.f32.mxu1 %v1670_v3  ;;  %v998_v14 = vld [vmem:[%s2359_s4 + $0x30] sm:$0xff] }
 0x272   :  { %1653 = vmatprep.subr.bf16.mxu1 %v2126_v37  ;;  %1293 = vmatprep.mubr.f32.mxu0 %v1670_v3  ;;  %v1054_v50 = vpop.permute.xlu1 %1053 }
 0x274   :  { %1404 = vmatmul.mubr.msk.f32.gmra.mrb[22].mxu1 %vm815_vm3, %v993_v4  ;;  %1412 = vmatmul.mubr.msk.f32.gmra.mrb[30].mxu0 %vm815_vm3, %v993_v4 }
 0x275   :  { %1655 = vmatpush1.bf16.msra.mxu1 %v2102_v63  ;;  %1186 = vmatprep.mubr.f32.mxu1 %v1670_v3 }
 0x276   :  { %1299 = vmatprep.mubr.f32.mxu0 %v1670_v3  ;;  %v1059_v16 = vpop.permute.xlu1 %1058 }
 0x278   :  { %1405 = vmatmul.mubr.msk.f32.gmra.mrb[24].mxu1 %vm815_vm3, %v994_v11  ;;  %1413 = vmatmul.mubr.msk.f32.gmra.mrb[32].mxu0 %vm815_vm3, %v994_v11 }
 0x279   :  { %1192 = vmatprep.mubr.f32.mxu1 %v1670_v3  ;;  %1305 = vmatprep.mubr.f32.mxu0 %v1670_v3 }
 0x27a   :  { %v1064_v26 = vpop.permute.xlu1 %1063 }
 0x27c   :  { %1406 = vmatmul.mubr.msk.f32.gmra.mrb[26].mxu1 %vm815_vm3, %v995_v29  ;;  %1414 = vmatmul.mubr.msk.f32.gmra.mrb[34].mxu0 %vm815_vm3, %v995_v29 }
 0x27d   :  { %1198 = vmatprep.mubr.f32.mxu1 %v1670_v3  ;;  %1311 = vmatprep.mubr.f32.mxu0 %v1670_v3 }
 0x27e   :  { %v1074_v60 = vpop.permute.xlu1 %1073 }
 0x280   :  { %1407 = vmatmul.mubr.msk.f32.gmra.mrb[28].mxu1 %vm815_vm3, %v996_v31  ;;  %1415 = vmatmul.mubr.msk.f32.gmra.mrb[36].mxu0 %vm815_vm3, %v996_v31 }
 0x281   :  { %1204 = vmatprep.mubr.f32.mxu1 %v1670_v3  ;;  %1317 = vmatprep.mubr.f32.mxu0 %v1670_v3 }
 0x284   :  { %1408 = vmatmul.mubr.msk.f32.gmra.mrb[30].mxu1 %vm815_vm3, %v997_v41  ;;  %1416 = vmatmul.mubr.msk.f32.gmra.mrb[38].mxu0 %vm815_vm3, %v997_v41 }
 0x285   :  { %1210 = vmatprep.mubr.f32.mxu1 %v1670_v3  ;;  %1323 = vmatprep.mubr.f32.mxu0 %v1670_v3 }
 0x288   :  { %1409 = vmatmul.mubr.msk.f32.gmra.mrb[32].mxu1 %vm815_vm3, %v998_v14  ;;  %1417 = vmatmul.mubr.msk.f32.gmra.mrb[40].mxu0 %vm815_vm3, %v998_v14 }
 0x289   :  { %1216 = vmatprep.mubr.f32.mxu1 %v1670_v3 }
 0x28c   :  { %1410 = vmatmul.mubr.msk.f32.gmra.mrb[34].mxu1 %vm815_vm3, %v999_v19 }
 0x28d   :  { %1329 = vmatprep.mubr.f32.mxu1 %v1670_v3 }
 0x290   :  { %1418 = vmatmul.mubr.msk.f32.vlgmr.msra.gmra.mrb[36].mxu1 %vm815_vm3, %v999_v19 }
 0x29c   :  { %v1069_v53 = vpop.permute.xlu0 %1068 }
 0x33b   :  { %v888_v63 = vpop.f32.mrb[16].mxu1  ;;  %v965_v35 = vpop.f32.mrb[24].mxu0 }
 0x33c   :  { %v976_v37 = vmul.f32 7.0, %v888_v63  ;;  %v978_v45 = vmul.f32 7.0, %v965_v35  ;;  %v890_v17 = vpop.f32.mrb[17].mxu1  ;;  %v967_v10 = vpop.f32.mrb[25].mxu0 }
 0x33d   :  { %v977_v18 = vmul.f32 7.0, %v890_v17  ;;  %v979_v43 = vmul.f32 7.0, %v967_v10 }
 0x33e   :  { %984 = vst [vmem:[%s2360_s7] sm:$0xff] %v976_v37  ;;  %986 = vst [vmem:[%s2360_s7 + $0x10] sm:$0xff] %v978_v45  ;;  %v1079_v37 = vpop.permute.xlu1 %1078 }
 0x33f   :  { %985 = vst [vmem:[%s2360_s7 + $0x8] sm:$0xff] %v977_v18  ;;  %987 = vst [vmem:[%s2360_s7 + $0x18] sm:$0xff] %v979_v43  ;;  %v894_v3 = vpop.f32.mrb[18].mxu1  ;;  %v971_v61 = vpop.f32.mrb[26].mxu0 }
 0x340   :  { %v980_v24 = vmul.f32 7.0, %v894_v3  ;;  %v982_v36 = vmul.f32 7.0, %v971_v61  ;;  %v896_v21 = vpop.f32.mrb[19].mxu1  ;;  %v973_v22 = vpop.f32.mrb[27].mxu0 }
 0x341   :  { %v981_v23 = vmul.f32 7.0, %v896_v21  ;;  %v983_v27 = vmul.f32 7.0, %v973_v22 }
 0x342   :  { %988 = vst [vmem:[%s2360_s7 + $0x20] sm:$0xff] %v980_v24  ;;  %990 = vst [vmem:[%s2360_s7 + $0x30] sm:$0xff] %v982_v36  ;;  %v1084_v22 = vpop.permute.xlu1 %1083 }
 0x343   :  { %989 = vst [vmem:[%s2360_s7 + $0x28] sm:$0xff] %v981_v23  ;;  %991 = vst [vmem:[%s2360_s7 + $0x38] sm:$0xff] %v983_v27  ;;  %v1176_v44 = vpop.f32.mrb[20].mxu1  ;;  %v1289_v30 = vpop.f32.mrb[28].mxu0 }
 0x344   :  { %v1177_v34 = vadd.f32 %v1176_v44, %v1049_v25  ;;  %v1178_v39 = vpop.f32.mrb[21].mxu1  ;;  %v1290_v40 = vadd.f32 %v1289_v30, %v1049_v25  ;;  %v1291_v42 = vpop.f32.mrb[29].mxu0 }
 0x345   :  { %v1179_v47 = vadd.f32 %v1178_v39, %v1049_v25  ;;  %v1292_v48 = vadd.f32 %v1291_v42, %v1049_v25 }
 0x346   :  { %1336 = vst [vmem:[%s2361_s6] sm:$0xff] %v1177_v34  ;;  %1338 = vst [vmem:[%s2361_s6 + $0x10] sm:$0xff] %v1290_v40 }
 0x347   :  { %1337 = vst [vmem:[%s2361_s6 + $0x8] sm:$0xff] %v1179_v47  ;;  %v1182_v51 = vpop.f32.mrb[22].mxu1  ;;  %1339 = vst [vmem:[%s2361_s6 + $0x18] sm:$0xff] %v1292_v48  ;;  %v1295_v52 = vpop.f32.mrb[30].mxu0 }
 0x348   :  { %v1183_v55 = vadd.f32 %v1182_v51, %v1054_v50  ;;  %v1184_v56 = vpop.f32.mrb[23].mxu1  ;;  %v1296_v57 = vadd.f32 %v1295_v52, %v1054_v50  ;;  %v1297_v58 = vpop.f32.mrb[31].mxu0 }
 0x349   :  { %v1185_v59 = vadd.f32 %v1184_v56, %v1054_v50  ;;  %v1298_v13 = vadd.f32 %v1297_v58, %v1054_v50 }
 0x34a   :  { %1340 = vst [vmem:[%s2361_s6 + $0x20] sm:$0xff] %v1183_v55  ;;  %1342 = vst [vmem:[%s2361_s6 + $0x30] sm:$0xff] %v1296_v57 }
 0x34b   :  { %1341 = vst [vmem:[%s2361_s6 + $0x28] sm:$0xff] %v1185_v59  ;;  %1343 = vst [vmem:[%s2361_s6 + $0x38] sm:$0xff] %v1298_v13  ;;  %v1188_v54 = vpop.f32.mrb[24].mxu1  ;;  %v1301_v0 = vpop.f32.mrb[32].mxu0 }
 0x34c   :  { %v1189_v62 = vadd.f32 %v1188_v54, %v1059_v16  ;;  %v1302_v2 = vadd.f32 %v1301_v0, %v1059_v16  ;;  %v1190_v38 = vpop.f32.mrb[25].mxu1  ;;  %v1303_v5 = vpop.f32.mrb[33].mxu0 }
 0x34d   :  { %v1191_v6 = vadd.f32 %v1190_v38, %v1059_v16  ;;  %v1304_v7 = vadd.f32 %v1303_v5, %v1059_v16 }
 0x34e   :  { %1344 = vst [vmem:[%s2361_s6 + $0x40] sm:$0xff] %v1189_v62  ;;  %1346 = vst [vmem:[%s2361_s6 + $0x50] sm:$0xff] %v1302_v2 }
 0x34f   :  { %1345 = vst [vmem:[%s2361_s6 + $0x48] sm:$0xff] %v1191_v6  ;;  %1347 = vst [vmem:[%s2361_s6 + $0x58] sm:$0xff] %v1304_v7  ;;  %v1194_v9 = vpop.f32.mrb[26].mxu1  ;;  %v1307_v33 = vpop.f32.mrb[34].mxu0 }
 0x350   :  { %v1195_v12 = vadd.f32 %v1194_v9, %v1064_v26  ;;  %v1308_v32 = vadd.f32 %v1307_v33, %v1064_v26  ;;  %v1196_v46 = vpop.f32.mrb[27].mxu1  ;;  %v1309_v8 = vpop.f32.mrb[35].mxu0 }
 0x351   :  { %v1197_v28 = vadd.f32 %v1196_v46, %v1064_v26  ;;  %v1310_v49 = vadd.f32 %v1309_v8, %v1064_v26 }
 0x352   :  { %1348 = vst [vmem:[%s2361_s6 + $0x60] sm:$0xff] %v1195_v12  ;;  %1350 = vst [vmem:[%s2361_s6 + $0x70] sm:$0xff] %v1308_v32 }
 0x353   :  { %1349 = vst [vmem:[%s2361_s6 + $0x68] sm:$0xff] %v1197_v28  ;;  %1351 = vst [vmem:[%s2361_s6 + $0x78] sm:$0xff] %v1310_v49  ;;  %v1200_v15 = vpop.f32.mrb[28].mxu1  ;;  %v1313_v20 = vpop.f32.mrb[36].mxu0 }
 0x354   :  { %v1201_v1 = vadd.f32 %v1200_v15, %v1069_v53  ;;  %v1202_v4 = vpop.f32.mrb[29].mxu1  ;;  %v1314_v11 = vadd.f32 %v1313_v20, %v1069_v53  ;;  %v1315_v29 = vpop.f32.mrb[37].mxu0 }
 0x355   :  { %v1203_v31 = vadd.f32 %v1202_v4, %v1069_v53  ;;  %v1316_v41 = vadd.f32 %v1315_v29, %v1069_v53 }
 0x356   :  { %1352 = vst [vmem:[%s2361_s6 + $0x80] sm:$0xff] %v1201_v1  ;;  %1354 = vst [vmem:[%s2361_s6 + $0x90] sm:$0xff] %v1314_v11 }
 0x357   :  { %1353 = vst [vmem:[%s2361_s6 + $0x88] sm:$0xff] %v1203_v31  ;;  %1355 = vst [vmem:[%s2361_s6 + $0x98] sm:$0xff] %v1316_v41  ;;  %v1206_v14 = vpop.f32.mrb[30].mxu1  ;;  %v1319_v19 = vpop.f32.mrb[38].mxu0 }
 0x358   :  { %v1207_v25 = vadd.f32 %v1206_v14, %v1074_v60  ;;  %v1320_v50 = vadd.f32 %v1319_v19, %v1074_v60  ;;  %v1208_v63 = vpop.f32.mrb[31].mxu1  ;;  %v1321_v35 = vpop.f32.mrb[39].mxu0 }
 0x359   :  { %v1209_v45 = vadd.f32 %v1208_v63, %v1074_v60  ;;  %v1322_v17 = vadd.f32 %v1321_v35, %v1074_v60 }
 0x35a   :  { %1356 = vst [vmem:[%s2361_s6 + $0xa0] sm:$0xff] %v1207_v25  ;;  %1358 = vst [vmem:[%s2361_s6 + $0xb0] sm:$0xff] %v1320_v50 }
 0x35b   :  { %1357 = vst [vmem:[%s2361_s6 + $0xa8] sm:$0xff] %v1209_v45  ;;  %1359 = vst [vmem:[%s2361_s6 + $0xb8] sm:$0xff] %v1322_v17  ;;  %v1212_v10 = vpop.f32.mrb[32].mxu1  ;;  %v1325_v18 = vpop.f32.mrb[40].mxu0 }
 0x35c   :  { %v1213_v43 = vadd.f32 %v1212_v10, %v1079_v37  ;;  %v1326_v3 = vadd.f32 %v1325_v18, %v1079_v37  ;;  %v1214_v61 = vpop.f32.mrb[33].mxu1  ;;  %v1327_v24 = vpop.f32.mrb[41].mxu0 }
 0x35d   :  { %v1215_v36 = vadd.f32 %v1214_v61, %v1079_v37  ;;  %v1328_v21 = vadd.f32 %v1327_v24, %v1079_v37 }
 0x35e   :  { %1360 = vst [vmem:[%s2361_s6 + $0xc0] sm:$0xff] %v1213_v43  ;;  %1362 = vst [vmem:[%s2361_s6 + $0xd0] sm:$0xff] %v1326_v3 }
 0x35f   :  { %1361 = vst [vmem:[%s2361_s6 + $0xc8] sm:$0xff] %v1215_v36  ;;  %1363 = vst [vmem:[%s2361_s6 + $0xd8] sm:$0xff] %v1328_v21  ;;  %v1218_v23 = vpop.f32.mrb[34].mxu1 }
 0x360   :  { %v1219_v27 = vadd.f32 %v1218_v23, %v1084_v22  ;;  %v1220_v16 = vpop.f32.mrb[35].mxu1 }
 0x361   :  { %v1221_v44 = vadd.f32 %v1220_v16, %v1084_v22 }
 0x362   :  { %1364 = vst [vmem:[%s2361_s6 + $0xe0] sm:$0xff] %v1219_v27 }
 0x363   :  { %1365 = vst [vmem:[%s2361_s6 + $0xe8] sm:$0xff] %v1221_v44  ;;  %v1331_v30 = vpop.f32.mrb[36].mxu1 }
 0x364   :  { %v1332_v34 = vadd.f32 %v1331_v30, %v1084_v22  ;;  %v1333_v39 = vpop.f32.mrb[37].mxu1 }
 0x365   :  { %v1334_v40 = vadd.f32 %v1333_v39, %v1084_v22 }
 0x366   :  { %1366 = vst [vmem:[%s2361_s6 + $0xf0] sm:$0xff] %v1332_v34 }
 0x367   :  { %1367 = vst [vmem:[%s2361_s6 + $0xf8] sm:$0xff] %v1334_v40 }

</bundles_post_ra>
